<compile_context>
chip_gen: v6e
topology: v6e:2x2x1
jax: 0.10.0
libtpu: 0.0.40
codegen_flags: <defaults>
</compile_context>

<pallas_src>
import functools
import math

import jax
import jax.numpy as jnp
from jax.experimental import pallas as pl
from jax.experimental.pallas import tpu as pltpu


def _coder_kernel(alpha_ref,            # SMEM (N,)          PReLU slope per layer
                  x_ref,                # VMEM (B*S, L)      input rows
                  bias_ref,             # VMEM (B*S, B*S)    block-diagonal additive mask
                  wcat_ref, bcat_ref,   # VMEM (N, L, 2L+P), (N, 1, 2L+P)  [Wq^T | Wk^T | We^T]
                  wv_ref, bv_ref,       # VMEM (N, P, P),    (N, 1, P)      Wv^T
                  wd_ref, bd_ref,       # VMEM (N, P, L),    (N, 1, L)      Wd^T
                  o_ref,                # VMEM (B*S, L)
                  *, num_layers, sub_len, scale):
    L = sub_len
    x = x_ref[...]                                    # (R, L), R = B*S
    bias = bias_ref[...]                              # (R, R): 0 within batch, -1e30 across

    for i in range(num_layers):                       # statically unrolled; weights stay in VMEM
        # Fused encode / Q / K projection: one MXU push over all B*S rows.
        xcat = jnp.dot(x, wcat_ref[i],
                       preferred_element_type=jnp.float32) + bcat_ref[i]   # (R, 2L+P)
        q = xcat[:, :L]
        k = xcat[:, L:2 * L]
        patterns = xcat[:, 2 * L:]                                         # (R, P)

        v = jnp.dot(patterns, wv_ref[i],
                    preferred_element_type=jnp.float32) + bv_ref[i]        # (R, P)

        # Scaled dot-product attention over all rows at once; the additive bias makes
        # the softmax exactly block-diagonal (no cross-batch mixing).
        s = jnp.dot(q, k.T, preferred_element_type=jnp.float32) * scale + bias   # (R, R)
        s = s - jnp.max(s, axis=-1, keepdims=True)                               # stable=True
        p = jnp.exp(s)
        w = p * pl.reciprocal(jnp.sum(p, axis=-1, keepdims=True), approx=True)
        attn = jnp.dot(w, v, preferred_element_type=jnp.float32)                 # (R, P)

        # decode + residual + PReLU (single shared alpha per layer)
        dec = jnp.dot(attn, wd_ref[i],
                      preferred_element_type=jnp.float32) + bd_ref[i]            # (R, L)
        y = dec + x
        a = alpha_ref[i]
        x = jnp.where(y > 0.0, y, a * y)

    o_ref[...] = x


def coder_forward(x, packed):
    """x: (B, S, L) float32.  packed: stacked / pre-transposed per-layer params."""
    B, S, L = x.shape
    N = packed["wcat"].shape[0]
    R = B * S
    scale = 1.0 / math.sqrt(L)

    x2 = x.reshape(R, L)
    batch_id = jnp.arange(R, dtype=jnp.int32) // S
    bias = jnp.where(batch_id[:, None] == batch_id[None, :],
                     jnp.float32(0.0), jnp.float32(-1e30))                 # (R, R)

    kernel = functools.partial(_coder_kernel,
                               num_layers=N, sub_len=L, scale=scale)
    vmem = lambda: pl.BlockSpec(memory_space=pltpu.MemorySpace.VMEM)

    out2 = pl.pallas_call(
        kernel,
        out_shape=jax.ShapeDtypeStruct((R, L), jnp.float32),
        in_specs=[
            pl.BlockSpec(memory_space=pltpu.MemorySpace.SMEM),   # alpha (N,)
            vmem(),                                              # x (B*S, L)
            vmem(),                                              # bias (B*S, B*S)
            vmem(), vmem(),                                      # wcat, bcat
            vmem(), vmem(),                                      # wv_t, bv
            vmem(), vmem(),                                      # wd_t, bd
        ],
        out_specs=pl.BlockSpec(memory_space=pltpu.MemorySpace.VMEM),
    )(packed["alpha"], x2, bias,
      packed["wcat"], packed["bcat"],
      packed["wv_t"], packed["bv"],
      packed["wd_t"], packed["bd"])

    return out2.reshape(B, S, L)


def make_layer_params(key, sub_seq_len, pattern_num):
    L, P = sub_seq_len, pattern_num
    ks = jax.random.split(key, 10)
    n = lambda k, shp, fan_in: (jax.random.normal(k, shp, jnp.float32)
                                / math.sqrt(fan_in))
    return dict(
        we=n(ks[0], (P, L), L), be=n(ks[1], (1, P), L),
        wq=n(ks[2], (L, L), L), bq=n(ks[3], (1, L), L),
        wk=n(ks[4], (L, L), L), bk=n(ks[5], (1, L), L),
        wv=n(ks[6], (P, P), P), bv=n(ks[7], (1, P), P),
        wd=n(ks[8], (L, P), P), bd=n(ks[9], (1, L), P),
        alpha=jnp.array([0.25], jnp.float32),          # nn.PReLU() default
    )


def pack_coder_params(layers):
    """Host-side packing: stack over layers, fuse encode/Q/K, pre-transpose all weights."""
    wcat = jnp.stack([jnp.concatenate([p["wq"].T, p["wk"].T, p["we"].T], axis=1)
                      for p in layers])                                    # (N, L, 2L+P)
    bcat = jnp.stack([jnp.concatenate([p["bq"], p["bk"], p["be"]], axis=1)
                      for p in layers])                                    # (N, 1, 2L+P)
    return dict(
        wcat=wcat, bcat=bcat,
        wv_t=jnp.stack([p["wv"].T for p in layers]),                       # (N, P, P)
        bv=jnp.stack([p["bv"] for p in layers]),                           # (N, 1, P)
        wd_t=jnp.stack([p["wd"].T for p in layers]),                       # (N, P, L)
        bd=jnp.stack([p["bd"] for p in layers]),                           # (N, 1, L)
        alpha=jnp.concatenate([p["alpha"] for p in layers]),               # (N,)
    )


def coder_reference(x, layers):
    """Pure-JAX reference: N sequential Layer applications with per-batch attention."""
    for p in layers:
        patterns = x @ p["we"].T + p["be"]
        q = x @ p["wq"].T + p["bq"]
        k = x @ p["wk"].T + p["bk"]
        v = patterns @ p["wv"].T + p["bv"]
        s = jnp.einsum("bql,bkl->bqk", q, k) / math.sqrt(x.shape[-1])
        s = s - s.max(-1, keepdims=True)
        w = jnp.exp(s) / jnp.exp(s).sum(-1, keepdims=True)
        a = jnp.einsum("bqk,bkp->bqp", w, v)
        y = a @ p["wd"].T + p["bd"] + x
        x = jnp.where(y > 0, y, p["alpha"][0] * y)
    return x


if __name__ == "__main__":
    B, S = 2, 8                   # batch, number of sub-sequences
    sub_seq_len = 16
    pattern_num = 8
    layer_num = 3                 # Coder depth

    key = jax.random.PRNGKey(0)
    kx, kp = jax.random.split(key)
    x = jax.random.normal(kx, (B, S, sub_seq_len), jnp.float32)
    layer_keys = jax.random.split(kp, layer_num)
    layers = [make_layer_params(k, sub_seq_len, pattern_num) for k in layer_keys]
    packed = pack_coder_params(layers)

    out = coder_forward(x, packed)
    out = jax.block_until_ready(out)

    ref = coder_reference(x, layers)
    assert out.shape == (B, S, sub_seq_len)
    # approx=True reciprocal (EUP vrcp) => slightly looser tolerance than exact divide.
    err = float(jnp.max(jnp.abs(out - ref)))
    assert jnp.allclose(out, ref, atol=2e-2, rtol=2e-2), err

    print("KERNEL_OK")
</pallas_src>

<mosaic_0001>
module attributes {stable_mosaic.version = 11 : i64} {
  func.func @_coder_kernel(%arg0: memref<3xf32, #tpu.memory_space<smem>>, %arg1: memref<16x16xf32, #tpu.memory_space<vmem>>, %arg2: memref<16x16xf32, #tpu.memory_space<vmem>>, %arg3: memref<3x16x40xf32, #tpu.memory_space<vmem>>, %arg4: memref<3x1x40xf32, #tpu.memory_space<vmem>>, %arg5: memref<3x8x8xf32, #tpu.memory_space<vmem>>, %arg6: memref<3x1x8xf32, #tpu.memory_space<vmem>>, %arg7: memref<3x8x16xf32, #tpu.memory_space<vmem>>, %arg8: memref<3x1x16xf32, #tpu.memory_space<vmem>>, %arg9: memref<16x16xf32, #tpu.memory_space<vmem>>) attributes {dimension_semantics = [], scalar_prefetch = 0 : i64, scratch_operands = 0 : i64, tpu.core_type = #tpu.core_type<tc>} {
    %c0 = arith.constant 0 : index
    %c0_0 = arith.constant 0 : index
    %0 = vector.load %arg1[%c0, %c0_0] : memref<16x16xf32, #tpu.memory_space<vmem>>, vector<16x16xf32>
    %c0_1 = arith.constant 0 : index
    %c0_2 = arith.constant 0 : index
    %1 = vector.load %arg2[%c0_1, %c0_2] : memref<16x16xf32, #tpu.memory_space<vmem>>, vector<16x16xf32>
    %c0_3 = arith.constant 0 : index
    %c0_4 = arith.constant 0 : index
    %c0_5 = arith.constant 0 : index
    %2 = vector.load %arg3[%c0_3, %c0_4, %c0_5] : memref<3x16x40xf32, #tpu.memory_space<vmem>>, vector<1x16x40xf32>
    %3 = vector.shape_cast %2 : vector<1x16x40xf32> to vector<16x40xf32>
    %cst = arith.constant dense<0.000000e+00> : vector<16x40xf32>
    %4 = tpu.matmul %0, %3, %cst {dimension_numbers = #tpu.dot_dimension_numbers<[1], [0], [0], [1], [0, 0, 1, 1], [], []>} : vector<16x16xf32>, vector<16x40xf32>, vector<16x40xf32> -> vector<16x40xf32>
    %c0_6 = arith.constant 0 : index
    %c0_7 = arith.constant 0 : index
    %c0_8 = arith.constant 0 : index
    %5 = vector.load %arg4[%c0_6, %c0_7, %c0_8] : memref<3x1x40xf32, #tpu.memory_space<vmem>>, vector<1x1x40xf32>
    %6 = vector.shape_cast %5 : vector<1x1x40xf32> to vector<1x40xf32>
    %7 = vector.broadcast %6 : vector<1x40xf32> to vector<16x40xf32>
    %8 = arith.addf %4, %7 : vector<16x40xf32>
    %9 = vector.extract_strided_slice %8 {offsets = [0, 0], sizes = [16, 16], strides = [1, 1]} : vector<16x40xf32> to vector<16x16xf32>
    %10 = vector.extract_strided_slice %8 {offsets = [0, 16], sizes = [16, 16], strides = [1, 1]} : vector<16x40xf32> to vector<16x16xf32>
    %11 = vector.extract_strided_slice %8 {offsets = [0, 32], sizes = [16, 8], strides = [1, 1]} : vector<16x40xf32> to vector<16x8xf32>
    %c0_9 = arith.constant 0 : index
    %c0_10 = arith.constant 0 : index
    %c0_11 = arith.constant 0 : index
    %12 = vector.load %arg5[%c0_9, %c0_10, %c0_11] : memref<3x8x8xf32, #tpu.memory_space<vmem>>, vector<1x8x8xf32>
    %13 = vector.shape_cast %12 : vector<1x8x8xf32> to vector<8x8xf32>
    %cst_12 = arith.constant dense<0.000000e+00> : vector<16x8xf32>
    %14 = tpu.matmul %11, %13, %cst_12 {dimension_numbers = #tpu.dot_dimension_numbers<[1], [0], [0], [1], [0, 0, 1, 1], [], []>} : vector<16x8xf32>, vector<8x8xf32>, vector<16x8xf32> -> vector<16x8xf32>
    %c0_13 = arith.constant 0 : index
    %c0_14 = arith.constant 0 : index
    %c0_15 = arith.constant 0 : index
    %15 = vector.load %arg6[%c0_13, %c0_14, %c0_15] : memref<3x1x8xf32, #tpu.memory_space<vmem>>, vector<1x1x8xf32>
    %16 = vector.shape_cast %15 : vector<1x1x8xf32> to vector<1x8xf32>
    %17 = vector.broadcast %16 : vector<1x8xf32> to vector<16x8xf32>
    %18 = arith.addf %14, %17 : vector<16x8xf32>
    %19 = tpu.transpose %10, [1, 0] : vector<16x16xf32> -> vector<16x16xf32>
    %cst_16 = arith.constant dense<0.000000e+00> : vector<16x16xf32>
    %20 = tpu.matmul %9, %19, %cst_16 {dimension_numbers = #tpu.dot_dimension_numbers<[1], [0], [0], [1], [0, 0, 1, 1], [], []>} : vector<16x16xf32>, vector<16x16xf32>, vector<16x16xf32> -> vector<16x16xf32>
    %cst_17 = arith.constant 2.500000e-01 : f32
    %21 = vector.broadcast %cst_17 : f32 to vector<16x16xf32>
    %22 = arith.mulf %20, %21 : vector<16x16xf32>
    %23 = arith.addf %22, %1 : vector<16x16xf32>
    %cst_18 = arith.constant dense<0xFF800000> : vector<16xf32>
    %24 = vector.multi_reduction <maximumf>, %23, %cst_18 [1] : vector<16x16xf32> to vector<16xf32>
    %25 = vector.shape_cast %24 : vector<16xf32> to vector<16x1xf32>
    %26 = vector.broadcast %25 : vector<16x1xf32> to vector<16x16xf32>
    %27 = arith.subf %23, %26 : vector<16x16xf32>
    %28 = math.exp %27 : vector<16x16xf32>
    %cst_19 = arith.constant dense<0.000000e+00> : vector<16xf32>
    %29 = vector.multi_reduction <add>, %28, %cst_19 [1] : vector<16x16xf32> to vector<16xf32>
    %30 = vector.shape_cast %29 : vector<16xf32> to vector<16x1xf32>
    %31 = tpu.reciprocal %30 {approx = true} : vector<16x1xf32> -> vector<16x1xf32>
    %32 = vector.broadcast %31 : vector<16x1xf32> to vector<16x16xf32>
    %33 = arith.mulf %28, %32 : vector<16x16xf32>
    %cst_20 = arith.constant dense<0.000000e+00> : vector<16x8xf32>
    %34 = tpu.matmul %33, %18, %cst_20 {dimension_numbers = #tpu.dot_dimension_numbers<[1], [0], [0], [1], [0, 0, 1, 1], [], []>} : vector<16x16xf32>, vector<16x8xf32>, vector<16x8xf32> -> vector<16x8xf32>
    %c0_21 = arith.constant 0 : index
    %c0_22 = arith.constant 0 : index
    %c0_23 = arith.constant 0 : index
    %35 = vector.load %arg7[%c0_21, %c0_22, %c0_23] : memref<3x8x16xf32, #tpu.memory_space<vmem>>, vector<1x8x16xf32>
    %36 = vector.shape_cast %35 : vector<1x8x16xf32> to vector<8x16xf32>
    %cst_24 = arith.constant dense<0.000000e+00> : vector<16x16xf32>
    %37 = tpu.matmul %34, %36, %cst_24 {dimension_numbers = #tpu.dot_dimension_numbers<[1], [0], [0], [1], [0, 0, 1, 1], [], []>} : vector<16x8xf32>, vector<8x16xf32>, vector<16x16xf32> -> vector<16x16xf32>
    %c0_25 = arith.constant 0 : index
    %c0_26 = arith.constant 0 : index
    %c0_27 = arith.constant 0 : index
    %38 = vector.load %arg8[%c0_25, %c0_26, %c0_27] : memref<3x1x16xf32, #tpu.memory_space<vmem>>, vector<1x1x16xf32>
    %39 = vector.shape_cast %38 : vector<1x1x16xf32> to vector<1x16xf32>
    %40 = vector.broadcast %39 : vector<1x16xf32> to vector<16x16xf32>
    %41 = arith.addf %37, %40 : vector<16x16xf32>
    %42 = arith.addf %41, %0 : vector<16x16xf32>
    %c0_28 = arith.constant 0 : index
    %43 = memref.load %arg0[%c0_28] : memref<3xf32, #tpu.memory_space<smem>>
    %cst_29 = arith.constant 0.000000e+00 : f32
    %44 = vector.broadcast %cst_29 : f32 to vector<16x16xf32>
    %45 = arith.cmpf ogt, %42, %44 : vector<16x16xf32>
    %46 = vector.broadcast %43 : f32 to vector<16x16xf32>
    %47 = arith.mulf %46, %42 : vector<16x16xf32>
    %48 = arith.select %45, %42, %47 : vector<16x16xi1>, vector<16x16xf32>
    %c1 = arith.constant 1 : index
    %c0_30 = arith.constant 0 : index
    %c0_31 = arith.constant 0 : index
    %49 = vector.load %arg3[%c1, %c0_30, %c0_31] : memref<3x16x40xf32, #tpu.memory_space<vmem>>, vector<1x16x40xf32>
    %50 = vector.shape_cast %49 : vector<1x16x40xf32> to vector<16x40xf32>
    %cst_32 = arith.constant dense<0.000000e+00> : vector<16x40xf32>
    %51 = tpu.matmul %48, %50, %cst_32 {dimension_numbers = #tpu.dot_dimension_numbers<[1], [0], [0], [1], [0, 0, 1, 1], [], []>} : vector<16x16xf32>, vector<16x40xf32>, vector<16x40xf32> -> vector<16x40xf32>
    %c1_33 = arith.constant 1 : index
    %c0_34 = arith.constant 0 : index
    %c0_35 = arith.constant 0 : index
    %52 = vector.load %arg4[%c1_33, %c0_34, %c0_35] : memref<3x1x40xf32, #tpu.memory_space<vmem>>, vector<1x1x40xf32>
    %53 = vector.shape_cast %52 : vector<1x1x40xf32> to vector<1x40xf32>
    %54 = vector.broadcast %53 : vector<1x40xf32> to vector<16x40xf32>
    %55 = arith.addf %51, %54 : vector<16x40xf32>
    %56 = vector.extract_strided_slice %55 {offsets = [0, 0], sizes = [16, 16], strides = [1, 1]} : vector<16x40xf32> to vector<16x16xf32>
    %57 = vector.extract_strided_slice %55 {offsets = [0, 16], sizes = [16, 16], strides = [1, 1]} : vector<16x40xf32> to vector<16x16xf32>
    %58 = vector.extract_strided_slice %55 {offsets = [0, 32], sizes = [16, 8], strides = [1, 1]} : vector<16x40xf32> to vector<16x8xf32>
    %c1_36 = arith.constant 1 : index
    %c0_37 = arith.constant 0 : index
    %c0_38 = arith.constant 0 : index
    %59 = vector.load %arg5[%c1_36, %c0_37, %c0_38] : memref<3x8x8xf32, #tpu.memory_space<vmem>>, vector<1x8x8xf32>
    %60 = vector.shape_cast %59 : vector<1x8x8xf32> to vector<8x8xf32>
    %cst_39 = arith.constant dense<0.000000e+00> : vector<16x8xf32>
    %61 = tpu.matmul %58, %60, %cst_39 {dimension_numbers = #tpu.dot_dimension_numbers<[1], [0], [0], [1], [0, 0, 1, 1], [], []>} : vector<16x8xf32>, vector<8x8xf32>, vector<16x8xf32> -> vector<16x8xf32>
    %c1_40 = arith.constant 1 : index
    %c0_41 = arith.constant 0 : index
    %c0_42 = arith.constant 0 : index
    %62 = vector.load %arg6[%c1_40, %c0_41, %c0_42] : memref<3x1x8xf32, #tpu.memory_space<vmem>>, vector<1x1x8xf32>
    %63 = vector.shape_cast %62 : vector<1x1x8xf32> to vector<1x8xf32>
    %64 = vector.broadcast %63 : vector<1x8xf32> to vector<16x8xf32>
    %65 = arith.addf %61, %64 : vector<16x8xf32>
    %66 = tpu.transpose %57, [1, 0] : vector<16x16xf32> -> vector<16x16xf32>
    %cst_43 = arith.constant dense<0.000000e+00> : vector<16x16xf32>
    %67 = tpu.matmul %56, %66, %cst_43 {dimension_numbers = #tpu.dot_dimension_numbers<[1], [0], [0], [1], [0, 0, 1, 1], [], []>} : vector<16x16xf32>, vector<16x16xf32>, vector<16x16xf32> -> vector<16x16xf32>
    %cst_44 = arith.constant 2.500000e-01 : f32
    %68 = vector.broadcast %cst_44 : f32 to vector<16x16xf32>
    %69 = arith.mulf %67, %68 : vector<16x16xf32>
    %70 = arith.addf %69, %1 : vector<16x16xf32>
    %cst_45 = arith.constant dense<0xFF800000> : vector<16xf32>
    %71 = vector.multi_reduction <maximumf>, %70, %cst_45 [1] : vector<16x16xf32> to vector<16xf32>
    %72 = vector.shape_cast %71 : vector<16xf32> to vector<16x1xf32>
    %73 = vector.broadcast %72 : vector<16x1xf32> to vector<16x16xf32>
    %74 = arith.subf %70, %73 : vector<16x16xf32>
    %75 = math.exp %74 : vector<16x16xf32>
    %cst_46 = arith.constant dense<0.000000e+00> : vector<16xf32>
    %76 = vector.multi_reduction <add>, %75, %cst_46 [1] : vector<16x16xf32> to vector<16xf32>
    %77 = vector.shape_cast %76 : vector<16xf32> to vector<16x1xf32>
    %78 = tpu.reciprocal %77 {approx = true} : vector<16x1xf32> -> vector<16x1xf32>
    %79 = vector.broadcast %78 : vector<16x1xf32> to vector<16x16xf32>
    %80 = arith.mulf %75, %79 : vector<16x16xf32>
    %cst_47 = arith.constant dense<0.000000e+00> : vector<16x8xf32>
    %81 = tpu.matmul %80, %65, %cst_47 {dimension_numbers = #tpu.dot_dimension_numbers<[1], [0], [0], [1], [0, 0, 1, 1], [], []>} : vector<16x16xf32>, vector<16x8xf32>, vector<16x8xf32> -> vector<16x8xf32>
    %c1_48 = arith.constant 1 : index
    %c0_49 = arith.constant 0 : index
    %c0_50 = arith.constant 0 : index
    %82 = vector.load %arg7[%c1_48, %c0_49, %c0_50] : memref<3x8x16xf32, #tpu.memory_space<vmem>>, vector<1x8x16xf32>
    %83 = vector.shape_cast %82 : vector<1x8x16xf32> to vector<8x16xf32>
    %cst_51 = arith.constant dense<0.000000e+00> : vector<16x16xf32>
    %84 = tpu.matmul %81, %83, %cst_51 {dimension_numbers = #tpu.dot_dimension_numbers<[1], [0], [0], [1], [0, 0, 1, 1], [], []>} : vector<16x8xf32>, vector<8x16xf32>, vector<16x16xf32> -> vector<16x16xf32>
    %c1_52 = arith.constant 1 : index
    %c0_53 = arith.constant 0 : index
    %c0_54 = arith.constant 0 : index
    %85 = vector.load %arg8[%c1_52, %c0_53, %c0_54] : memref<3x1x16xf32, #tpu.memory_space<vmem>>, vector<1x1x16xf32>
    %86 = vector.shape_cast %85 : vector<1x1x16xf32> to vector<1x16xf32>
    %87 = vector.broadcast %86 : vector<1x16xf32> to vector<16x16xf32>
    %88 = arith.addf %84, %87 : vector<16x16xf32>
    %89 = arith.addf %88, %48 : vector<16x16xf32>
    %c1_55 = arith.constant 1 : index
    %90 = memref.load %arg0[%c1_55] : memref<3xf32, #tpu.memory_space<smem>>
    %cst_56 = arith.constant 0.000000e+00 : f32
    %91 = vector.broadcast %cst_56 : f32 to vector<16x16xf32>
    %92 = arith.cmpf ogt, %89, %91 : vector<16x16xf32>
    %93 = vector.broadcast %90 : f32 to vector<16x16xf32>
    %94 = arith.mulf %93, %89 : vector<16x16xf32>
    %95 = arith.select %92, %89, %94 : vector<16x16xi1>, vector<16x16xf32>
    %c2 = arith.constant 2 : index
    %c0_57 = arith.constant 0 : index
    %c0_58 = arith.constant 0 : index
    %96 = vector.load %arg3[%c2, %c0_57, %c0_58] : memref<3x16x40xf32, #tpu.memory_space<vmem>>, vector<1x16x40xf32>
    %97 = vector.shape_cast %96 : vector<1x16x40xf32> to vector<16x40xf32>
    %cst_59 = arith.constant dense<0.000000e+00> : vector<16x40xf32>
    %98 = tpu.matmul %95, %97, %cst_59 {dimension_numbers = #tpu.dot_dimension_numbers<[1], [0], [0], [1], [0, 0, 1, 1], [], []>} : vector<16x16xf32>, vector<16x40xf32>, vector<16x40xf32> -> vector<16x40xf32>
    %c2_60 = arith.constant 2 : index
    %c0_61 = arith.constant 0 : index
    %c0_62 = arith.constant 0 : index
    %99 = vector.load %arg4[%c2_60, %c0_61, %c0_62] : memref<3x1x40xf32, #tpu.memory_space<vmem>>, vector<1x1x40xf32>
    %100 = vector.shape_cast %99 : vector<1x1x40xf32> to vector<1x40xf32>
    %101 = vector.broadcast %100 : vector<1x40xf32> to vector<16x40xf32>
    %102 = arith.addf %98, %101 : vector<16x40xf32>
    %103 = vector.extract_strided_slice %102 {offsets = [0, 0], sizes = [16, 16], strides = [1, 1]} : vector<16x40xf32> to vector<16x16xf32>
    %104 = vector.extract_strided_slice %102 {offsets = [0, 16], sizes = [16, 16], strides = [1, 1]} : vector<16x40xf32> to vector<16x16xf32>
    %105 = vector.extract_strided_slice %102 {offsets = [0, 32], sizes = [16, 8], strides = [1, 1]} : vector<16x40xf32> to vector<16x8xf32>
    %c2_63 = arith.constant 2 : index
    %c0_64 = arith.constant 0 : index
    %c0_65 = arith.constant 0 : index
    %106 = vector.load %arg5[%c2_63, %c0_64, %c0_65] : memref<3x8x8xf32, #tpu.memory_space<vmem>>, vector<1x8x8xf32>
    %107 = vector.shape_cast %106 : vector<1x8x8xf32> to vector<8x8xf32>
    %cst_66 = arith.constant dense<0.000000e+00> : vector<16x8xf32>
    %108 = tpu.matmul %105, %107, %cst_66 {dimension_numbers = #tpu.dot_dimension_numbers<[1], [0], [0], [1], [0, 0, 1, 1], [], []>} : vector<16x8xf32>, vector<8x8xf32>, vector<16x8xf32> -> vector<16x8xf32>
    %c2_67 = arith.constant 2 : index
    %c0_68 = arith.constant 0 : index
    %c0_69 = arith.constant 0 : index
    %109 = vector.load %arg6[%c2_67, %c0_68, %c0_69] : memref<3x1x8xf32, #tpu.memory_space<vmem>>, vector<1x1x8xf32>
    %110 = vector.shape_cast %109 : vector<1x1x8xf32> to vector<1x8xf32>
    %111 = vector.broadcast %110 : vector<1x8xf32> to vector<16x8xf32>
    %112 = arith.addf %108, %111 : vector<16x8xf32>
    %113 = tpu.transpose %104, [1, 0] : vector<16x16xf32> -> vector<16x16xf32>
    %cst_70 = arith.constant dense<0.000000e+00> : vector<16x16xf32>
    %114 = tpu.matmul %103, %113, %cst_70 {dimension_numbers = #tpu.dot_dimension_numbers<[1], [0], [0], [1], [0, 0, 1, 1], [], []>} : vector<16x16xf32>, vector<16x16xf32>, vector<16x16xf32> -> vector<16x16xf32>
    %cst_71 = arith.constant 2.500000e-01 : f32
    %115 = vector.broadcast %cst_71 : f32 to vector<16x16xf32>
    %116 = arith.mulf %114, %115 : vector<16x16xf32>
    %117 = arith.addf %116, %1 : vector<16x16xf32>
    %cst_72 = arith.constant dense<0xFF800000> : vector<16xf32>
    %118 = vector.multi_reduction <maximumf>, %117, %cst_72 [1] : vector<16x16xf32> to vector<16xf32>
    %119 = vector.shape_cast %118 : vector<16xf32> to vector<16x1xf32>
    %120 = vector.broadcast %119 : vector<16x1xf32> to vector<16x16xf32>
    %121 = arith.subf %117, %120 : vector<16x16xf32>
    %122 = math.exp %121 : vector<16x16xf32>
    %cst_73 = arith.constant dense<0.000000e+00> : vector<16xf32>
    %123 = vector.multi_reduction <add>, %122, %cst_73 [1] : vector<16x16xf32> to vector<16xf32>
    %124 = vector.shape_cast %123 : vector<16xf32> to vector<16x1xf32>
    %125 = tpu.reciprocal %124 {approx = true} : vector<16x1xf32> -> vector<16x1xf32>
    %126 = vector.broadcast %125 : vector<16x1xf32> to vector<16x16xf32>
    %127 = arith.mulf %122, %126 : vector<16x16xf32>
    %cst_74 = arith.constant dense<0.000000e+00> : vector<16x8xf32>
    %128 = tpu.matmul %127, %112, %cst_74 {dimension_numbers = #tpu.dot_dimension_numbers<[1], [0], [0], [1], [0, 0, 1, 1], [], []>} : vector<16x16xf32>, vector<16x8xf32>, vector<16x8xf32> -> vector<16x8xf32>
    %c2_75 = arith.constant 2 : index
    %c0_76 = arith.constant 0 : index
    %c0_77 = arith.constant 0 : index
    %129 = vector.load %arg7[%c2_75, %c0_76, %c0_77] : memref<3x8x16xf32, #tpu.memory_space<vmem>>, vector<1x8x16xf32>
    %130 = vector.shape_cast %129 : vector<1x8x16xf32> to vector<8x16xf32>
    %cst_78 = arith.constant dense<0.000000e+00> : vector<16x16xf32>
    %131 = tpu.matmul %128, %130, %cst_78 {dimension_numbers = #tpu.dot_dimension_numbers<[1], [0], [0], [1], [0, 0, 1, 1], [], []>} : vector<16x8xf32>, vector<8x16xf32>, vector<16x16xf32> -> vector<16x16xf32>
    %c2_79 = arith.constant 2 : index
    %c0_80 = arith.constant 0 : index
    %c0_81 = arith.constant 0 : index
    %132 = vector.load %arg8[%c2_79, %c0_80, %c0_81] : memref<3x1x16xf32, #tpu.memory_space<vmem>>, vector<1x1x16xf32>
    %133 = vector.shape_cast %132 : vector<1x1x16xf32> to vector<1x16xf32>
    %134 = vector.broadcast %133 : vector<1x16xf32> to vector<16x16xf32>
    %135 = arith.addf %131, %134 : vector<16x16xf32>
    %136 = arith.addf %135, %95 : vector<16x16xf32>
    %c2_82 = arith.constant 2 : index
    %137 = memref.load %arg0[%c2_82] : memref<3xf32, #tpu.memory_space<smem>>
    %cst_83 = arith.constant 0.000000e+00 : f32
    %138 = vector.broadcast %cst_83 : f32 to vector<16x16xf32>
    %139 = arith.cmpf ogt, %136, %138 : vector<16x16xf32>
    %140 = vector.broadcast %137 : f32 to vector<16x16xf32>
    %141 = arith.mulf %140, %136 : vector<16x16xf32>
    %142 = arith.select %139, %136, %141 : vector<16x16xi1>, vector<16x16xf32>
    %c0_84 = arith.constant 0 : index
    %c0_85 = arith.constant 0 : index
    %143 = vector.load %arg9[%c0_84, %c0_85] : memref<16x16xf32, #tpu.memory_space<vmem>>, vector<16x16xf32>
    tpu.vector_store %arg9[%c0_84, %c0_85], %142 {strides = array<i32>} : memref<16x16xf32, #tpu.memory_space<vmem>>, vector<16x16xf32>,
    return
  }
}

</mosaic_0001>

<bundles_post_ra>
// kernel: tpu_custom_call.1
= control target key start
LH: loop header
LB: loop body
LE: loop exit
PB: predicated region body
PF: predicated region fallthrough
CT: control target
= control target key end

     0   :  { %14 = vsyncpa [#allocation5], 0  ;;  %s2182_s0 = inlined_call_operand.hbm [shape: f32[3], index: 0, kind: input, shape index: {}]   ;;  %s2183_s1 = inlined_call_operand.hbm [shape: f32[16,16], index: 1, kind: input, shape index: {}]   ;;  %s2184_s2 = inlined_call_operand.hbm [shape: f32[16,16], index: 2, kind: input, shape index: {}]   ;;  %s2185_s3 = inlined_call_operand.hbm [shape: f32[3,16,40], index: 3, kind: input, shape index: {}]   ;;  %s2186_s4 = inlined_call_operand.vmem [shape: f32[3,1,40], index: 4, kind: input, shape index: {}]   ;;  %s2187_s5 = inlined_call_operand.hbm [shape: f32[3,8,8], index: 5, kind: input, shape index: {}]   ;;  %s2188_s6 = inlined_call_operand.vmem [shape: f32[3,1,8], index: 6, kind: input, shape index: {}]   ;;  %s2189_s7 = inlined_call_operand.hbm [shape: f32[3,8,16], index: 7, kind: input, shape index: {}]   ;;  %s2190_s8 = inlined_call_operand.vmem [shape: f32[3,1,16], index: 8, kind: input, shape index: {}]   ;;  %s2191_s9 = inlined_call_operand.hbm [shape: f32[16,16], index: 9, kind: output, shape index: {}]  }
   0x1   :  { %15 = vsyncpa [#allocation3], 0 }
   0x2   :  { %16 = vsyncpa [#allocation8], 0 }
   0x3   :  { %17 = vsyncpa [#allocation11], 0 }
   0x4   :  { %18 = vsyncpa [#allocation4], 0  ;;  %s1953_s30 = smov [#allocation7]   ;;  %s1954_s11 = smov [#allocation10]  }
   0x5   :  { %s44_s10 = sshll.u32 %s1953_s30, 4  ;;  %s70_s12 = sshll.u32 %s1954_s11, 4  ;;  %s45_s10 = int_to_ptr.vmem [resolvable:$true] %s44_s10  ;;  %s71_s12 = int_to_ptr.vmem [resolvable:$true] %s70_s12 }
   0x6   :  { %s1823_s13 = scalar_lea.vmem %s45_s10, 256  ;;  %p1828_p1 = scmp.lt.s32.totalorder %s45_s10, %s45_s10 }
   0x7   :  { %p1824_p0 = scmp.ne.s32.totalorder %s45_s10, %s1823_s13  ;;  %p1829_p2 = scmp.lt.s32.totalorder %s1823_s13, %s1823_s13 }
   0x9   :  { %p1830_p3 = por %p1829_p2, %p1828_p1 }
   0xb   :  { %p1831_p4 = pnand %p1830_p3, %p1824_p0 }
   0xd   :  { %1834 = shalt.err (!%p1831_p4)
}
   0xe   :  { %s1955_s14 = smov 128   ;;  %s1956_s15 = smov 8  }
   0xf   :  { %50 = dma.hbm_to_vmem [thread:$0]  %s2184_s2, 256, %s45_s10, [#allocation8], %s1955_s14, %s1955_s14, %s1956_s15  }
  0x10   :  { %s1843_s18 = scalar_lea.vmem %s71_s12, 384  ;;  %p1848_p6 = scmp.lt.s32.totalorder %s71_s12, %s71_s12 }
  0x11   :  { %p1844_p5 = scmp.ne.s32.totalorder %s71_s12, %s1843_s18  ;;  %p1849_p7 = scmp.lt.s32.totalorder %s1843_s18, %s1843_s18 }
  0x13   :  { %p1850_p8 = por %p1849_p7, %p1848_p6 }
  0x15   :  { %p1851_p9 = pnand %p1850_p8, %p1844_p5 }
  0x17   :  { %1854 = shalt.err (!%p1851_p9)
}
  0x18   :  { %76 = dma.hbm_to_vmem [thread:$0]  %s2187_s5, 384, %s71_s12, [#allocation11], %s1955_s14, %s1955_s14, %s1956_s15  }
  0x19   :  { %s1957_s21 = smov [#allocation2]   ;;  %s1958_s2 = smov [#allocation6]  }
  0x1a   :  { %26 = dma.hbm_to_smem %s2182_s0, 16, %s1957_s21, [#allocation5]  }
  0x1b   :  { %s32_s24 = sshll.u32 %s1958_s2, 4  ;;  %s1959_s25 = smov [#allocation9]   ;;  %s33_s24 = int_to_ptr.vmem [resolvable:$true] %s32_s24 }
  0x1c   :  { %s56_s26 = sshll.u32 %s1959_s25, 4  ;;  %s1871_s27 = scalar_lea.vmem %s33_s24, 256  ;;  %s57_s26 = int_to_ptr.vmem [resolvable:$true] %s56_s26 }
  0x1d   :  { %p1872_p10 = scmp.ne.s32.totalorder %s33_s24, %s1871_s27  ;;  %p1876_p11 = scmp.lt.s32.totalorder %s33_s24, %s33_s24 }
  0x1e   :  { %p1877_p12 = scmp.lt.s32.totalorder %s1871_s27, %s1871_s27 }
  0x20   :  { %p1878_p13 = por %p1877_p12, %p1876_p11 }
  0x22   :  { %p1879_p0 = pnand %p1878_p13, %p1872_p10 }
  0x24   :  { %1882 = shalt.err (!%p1879_p0)
}
  0x25   :  { %38 = dma.hbm_to_vmem [thread:$0]  %s2183_s1, 256, %s33_s24, [#allocation3], %s1955_s14, %s1955_s14, %s1956_s15  }
  0x26   :  { %s1891_s0 = scalar_lea.vmem %s57_s26, 768  ;;  %p1896_p2 = scmp.lt.s32.totalorder %s57_s26, %s57_s26 }
  0x27   :  { %p1892_p1 = scmp.ne.s32.totalorder %s57_s26, %s1891_s0  ;;  %p1897_p3 = scmp.lt.s32.totalorder %s1891_s0, %s1891_s0 }
  0x29   :  { %p1898_p4 = por %p1897_p3, %p1896_p2 }
  0x2b   :  { %p1899_p5 = pnand %p1898_p4, %p1892_p1 }
  0x2d   :  { %1902 = shalt.err (!%p1899_p5)
}
  0x2e   :  { %62 = dma.hbm_to_vmem [thread:$0]  %s2185_s3, 768, %s57_s26, [#allocation8], %s1955_s14, %s1955_s14, %s1956_s15  }
  0x2f   :  { %s1960_s10 = smov [#allocation12]  }
  0x30   :  { %s84_s11 = sshll.u32 %s1960_s10, 4  ;;  %s85_s11 = int_to_ptr.vmem [resolvable:$true] %s84_s11 }
  0x31   :  { %s1911_s12 = scalar_lea.vmem %s85_s11, 384  ;;  %p1916_p7 = scmp.lt.s32.totalorder %s85_s11, %s85_s11 }
  0x32   :  { %p1912_p6 = scmp.ne.s32.totalorder %s85_s11, %s1911_s12  ;;  %p1917_p8 = scmp.lt.s32.totalorder %s1911_s12, %s1911_s12 }
  0x34   :  { %p1918_p9 = por %p1917_p8, %p1916_p7 }
  0x36   :  { %p1919_p10 = pnand %p1918_p9, %p1912_p6 }
  0x38   :  { %1922 = shalt.err (!%p1919_p10)
}
  0x39   :  { %90 = dma.hbm_to_vmem [thread:$0]  %s2189_s7, 384, %s85_s11, [#allocation11], %s1955_s14, %s1955_s14, %s1956_s15  }
  0x3a   :  { %1943 = dma.done.wait [#allocation5], 16  }
  0x3b   :  { %1944 = vsyncadd [#allocation5], 4294967280 }
  0x3c   :  { %1945 = dma.done.wait [#allocation3], 256  }
  0x3d   :  { %1946 = vsyncadd [#allocation3], 4294967040 }
  0x3e   :  { %1947 = dma.done.wait [#allocation8], 1024  }
  0x3f   :  { %1948 = vsyncadd [#allocation8], 4294966272 }
  0x40   :  { %1949 = dma.done.wait [#allocation11], 768  }
  0x41   :  { %1950 = vsyncadd [#allocation11], 4294966528 }
  0x42   :  { %111 = sfence }
  0x43   :  { %v117_v0 = vld [vmem:[#allocation9 + $0x8] sm:$0xff]  ;;  %v116_v1 = vld [vmem:[#allocation9] sm:$0xff]  ;;  %vm125_vm0 = vcmask 130048   ;;  %v207_v4 = vld [vmem:[#allocation10] sm:$0xff]  ;;  %s1961_s16 = smov 96   ;;  %s1962_s17 = smov 112  }
  0x44   :  { %v2047_v2 = vld [vmem:[#allocation6] sm:$0xff]  ;;  %1687 = vmatprep.subr.mxu0 %v117_v0  ;;  %v2051_v3 = vld [vmem:[#allocation6 + $0x8] sm:$0xff]  ;;  %1694 = vmatprep.subr.mxu1 %v207_v4  ;;  %vm221_vm1 = vcmask 64512   ;;  %v2073_v20 = vld [vmem:[#allocation7 + $0x8] sm:$0xff]  ;;  %s586_s20 = sld [smem:[#allocation2]]  ;;  %s1963_s11 = smov [#allocation13]  }
  0x45   :  { %1691 = vmatprep.mubr.msk.f32.mxu0 %vm125_vm0, %v2047_v2  ;;  %1688 = vmatpush3.msra.mxu0 %v117_v0  ;;  %v1580_v5 = vld [vmem:[%s2186_s4] ss:$0 sm:$0xff]  ;;  %v2075_v23 = vld [vmem:[#allocation7] sm:$0xff]  ;;  %v495_v39 = vld [vmem:[#allocation12] sm:$0xff]  ;;  %s1613_s26 = sld [smem:[#allocation2 + $0x1]]  ;;  %s1565_s12 = sshll.u32 %s1963_s11, 4  ;;  %s1566_s12 = int_to_ptr.vmem [resolvable:$true] %s1565_s12 }
  0x46   :  { %1689 = vmatprep.subr.mxu0 %v116_v1  ;;  %1695 = vmatpush3.msra.mxu1 %v207_v4  ;;  %v1583_v14 = vld [vmem:[%s2188_s6] ss:$0 sm:$0xff]  ;;  %v596_v48 = vld [vmem:[#allocation9 + $0x18] sm:$0xff]  ;;  %v595_v49 = vld [vmem:[#allocation9 + $0x10] sm:$0xff]  ;;  %p1928_p12 = scmp.lt.s32.totalorder %s1566_s12, %s1566_s12 }
  0x47   :  { %1690 = vmatpush3.msra.mxu0 %v116_v1  ;;  %v1592_v50 = vld [vmem:[%s2190_s8] ss:$0 sm:$0xff]  ;;  %v687_v62 = vld [vmem:[#allocation10 + $0x8] sm:$0xff]  ;;  %v1596_v63 = vld [vmem:[%s2186_s4 + $0x1] ss:$0 sm:$0xff] }
  0x48   :  { %1692 = vmatmul.mubr.msk.f32.vlgmr.msra.gmra.mxu0 %vm125_vm0, %v2051_v3 }
  0x4a   :  { %v589_v55 = vstv %s586_s20 }
 0x108   :  { %v1693_v6 = vpop.f32.mrf.mxu0 }
 0x109   :  { %v204_v7 = vadd.f32 %v1693_v6, %v1580_v5 }
 0x10a   :  { %v198_v8 = vpop.f32.mrf.mxu0 }
 0x10b   :  { %v199_v9 = vadd.f32 %v1580_v5, %v198_v8  ;;  %219 = vrot.lane.b32.xlu1 %v204_v7, %s1961_s16  ;;  %v1600_v8 = vld [vmem:[%s2188_s6 + $0x1] ss:$0 sm:$0xff] }
 0x10d   :  { %217 = vrot.lane.b32.xlu0 %v199_v9, %s1961_s16 }
 0x10f   :  { %301 = vrot.lane.b32.xlu1 %v199_v9, %s1962_s17 }
 0x111   :  { %303 = vrot.lane.b32.xlu0 %v204_v7, %s1962_s17 }
 0x17d   :  { %v220_v10 = vpop.permute.xlu1 %219 }
 0x17f   :  { %v218_v11 = vpop.permute.xlu0 %217 }
 0x180   :  { %1696 = vmatprep.mubr.msk.f32.mxu1 %vm221_vm1, %v218_v11 }
 0x181   :  { %1697 = vmatmul.mubr.msk.f32.vlgmr.msra.gmra.mxu1 %vm221_vm1, %v220_v10  ;;  %v302_v13 = vpop.permute.xlu1 %301 }
 0x182   :  { %1703 = vmatprep.mubr.msk.f32.mxu1 %vm125_vm0, %v199_v9 }
 0x183   :  { %v304_v12 = vpop.permute.xlu0 %303 }
 0x184   :  { %1699 = vmatprep.subr.msk.mxu1 %vm125_vm0, %v304_v12 }
 0x185   :  { %1700 = vmatpush3.xpose.msk.msra.mxu1 %vm125_vm0, %v304_v12 }
 0x186   :  { %1701 = vmatprep.subr.msk.mxu1 %vm125_vm0, %v302_v13 }
 0x189   :  { %1702 = vmatpush3.xpose.msk.msra.mxu1 %vm125_vm0, %v302_v13 }
 0x18a   :  { %1718 = vmatprep.subr.mxu1 %v596_v48 }
 0x18c   :  { %1704 = vmatmul.mubr.msk.f32.vlgmr.msra.gmra.mxu1 %vm125_vm0, %v204_v7 }
 0x18d   :  { %1719 = vmatpush3.msra.mxu1 %v596_v48 }
 0x18e   :  { %1720 = vmatprep.subr.mxu1 %v595_v49 }
 0x18f   :  { %1721 = vmatpush3.msra.mxu1 %v595_v49  ;;  %v1071_v49 = vstv %s1613_s26 }
 0x241   :  { %v1698_v15 = vpop.f32.mrf.mxu1 }
 0x242   :  { %v298_v16 = vadd.f32 %v1698_v15, %v1583_v14 }
 0x243   :  { %v292_v17 = vpop.f32.mrf.mxu1 }
 0x244   :  { %v293_v18 = vadd.f32 %v1583_v14, %v292_v17  ;;  %1706 = vmatprep.subr.mxu0 %v298_v16 }
 0x245   :  { %1707 = vmatpush3.msra.mxu0 %v298_v16 }
 0x246   :  { %1708 = vmatprep.subr.mxu0 %v293_v18 }
 0x247   :  { %1709 = vmatpush3.msra.mxu0 %v293_v18 }
 0x248   :  { %1713 = vmatprep.subr.mxu0 %v495_v39 }
 0x24c   :  { %v1705_v19 = vpop.f32.mrf.mxu1 }
 0x24d   :  { %v389_v21 = vmul.f32 0.25, %v1705_v19 }
 0x24e   :  { %v379_v22 = vpop.f32.mrf.mxu1 }
 0x24f   :  { %v388_v24 = vmul.f32 0.25, %v379_v22  ;;  %v391_v25 = vadd.f32 %v389_v21, %v2073_v20 }
 0x251   :  { %v395_v26 = vsel %vm125_vm0, %v391_v25, -inf  ;;  %v390_v27 = vadd.f32 %v388_v24, %v2075_v23 }
 0x252   :  { %396 = vmax.xlane.f32.xlu1 %v395_v26 }
 0x253   :  { %v392_v28 = vsel %vm125_vm0, %v390_v27, -inf }
 0x254   :  { %393 = vmax.xlane.f32.xlu0 %v392_v28 }
 0x2db   :  { %v397_v29 = vpop.xlane.xlu1 %396 }
 0x2dc   :  { %v399_v30 = vsub.f32 %v391_v25, %v397_v29 }
 0x2dd   :  { %v394_v31 = vpop.xlane.xlu0 %393 }
 0x2de   :  { %v398_v32 = vsub.f32 %v390_v27, %v394_v31  ;;  %v402_v33 = vmul.f32 1.442695, %v399_v30 }
 0x2e0   :  { %v400_v34 = vmul.f32 1.442695, %v398_v32 }
 0x2e2   :  { %1791 = vpow2.f32 %v400_v34 }
 0x2e3   :  { %1793 = vpow2.f32 %v402_v33  ;;  %v976_v33 = vld [vmem:[#allocation12 + $0x8] sm:$0xff] }
 0x2ef   :  { %v1792_v35 = vpop.eup %1791 }
 0x2f0   :  { %v404_v36 = vsel %vm125_vm0, %v1792_v35, 0.0  ;;  %v1794_v37 = vpop.eup %1793 }
 0x2f1   :  { %405 = vadd.xlane.f32.xlu0 %v404_v36  ;;  %v407_v38 = vsel %vm125_vm0, %v1794_v37, 0.0 }
 0x2f5   :  { %408 = vadd.xlane.f32.xlu0 %v407_v38 }
 0x37a   :  { %v406_v40 = vpop.xlane.xlu0 %405 }
 0x37b   :  { %1795 = vrcp.f32 %v406_v40 }
 0x37e   :  { %v409_v41 = vpop.xlane.xlu0 %408 }
 0x37f   :  { %1797 = vrcp.f32 %v409_v41 }
 0x388   :  { %v1796_v42 = vpop.eup %1795 }
 0x389   :  { %v412_v43 = vmul.f32 %v1796_v42, %v1792_v35  ;;  %v1078_v42 = vld [vmem:[#allocation9 + $0x28] sm:$0xff] }
 0x38b   :  { %1710 = vmatprep.mubr.msk.f32.mxu0 %vm125_vm0, %v412_v43  ;;  %v1077_v43 = vld [vmem:[#allocation9 + $0x20] sm:$0xff] }
 0x38c   :  { %v1798_v44 = vpop.eup %1797 }
 0x38d   :  { %v413_v45 = vmul.f32 %v1798_v44, %v1794_v37  ;;  %v1610_v44 = vld [vmem:[%s2190_s8 + $0x1] ss:$0 sm:$0xff] }
 0x38f   :  { %1711 = vmatmul.mubr.msk.f32.vlgmr.msra.gmra.mxu0 %vm125_vm0, %v413_v45 }
 0x390   :  { %1714 = vmatpush3.msra.mxu0 %v495_v39 }
 0x391   :  { %1725 = vmatprep.subr.mxu0 %v687_v62 }
 0x44f   :  { %v1712_v46 = vpop.f32.mrf.mxu0 }
 0x451   :  { %v486_v47 = vpop.f32.mrf.mxu0 }
 0x452   :  { %1715 = vmatprep.mubr.msk.f32.mxu0 %vm221_vm1, %v486_v47 }
 0x453   :  { %1716 = vmatmul.mubr.msk.f32.vlgmr.msra.gmra.mxu0 %vm221_vm1, %v1712_v46 }
 0x454   :  { %1726 = vmatpush3.msra.mxu0 %v687_v62 }
 0x513   :  { %v1717_v51 = vpop.f32.mrf.mxu0 }
 0x514   :  { %v581_v52 = vadd.f32 %v1717_v51, %v1592_v50 }
 0x515   :  { %v575_v53 = vpop.f32.mrf.mxu0 }
 0x516   :  { %v585_v54 = vadd.f32 %v581_v52, %v2051_v3  ;;  %v576_v56 = vadd.f32 %v1592_v50, %v575_v53 }
 0x518   :  { %v584_v57 = vadd.f32 %v576_v56, %v2047_v2  ;;  %v591_v58 = vmul.f32 %v589_v55, %v585_v54  ;;  %vm588_vm2 = vcmp.gt.f32.partialorder %v585_v54, 0.0  ;;  %v1169_v56 = vld [vmem:[#allocation10 + $0x10] sm:$0xff] }
 0x51a   :  { %v590_v59 = vmul.f32 %v589_v55, %v584_v57  ;;  %vm587_vm3 = vcmp.gt.f32.partialorder %v584_v57, 0.0  ;;  %v2096_v61 = vsel %vm588_vm2, %v585_v54, %v591_v58 }
 0x51c   :  { %v2092_v60 = vsel %vm587_vm3, %v584_v57, %v590_v59  ;;  %v1615_v57 = vld [vmem:[%s2186_s4 + $0x2] ss:$0 sm:$0xff] }
 0x51d   :  { %1722 = vmatprep.mubr.msk.f32.mxu1 %vm125_vm0, %v2092_v60 }
 0x51e   :  { %1723 = vmatmul.mubr.msk.f32.vlgmr.msra.gmra.mxu1 %vm125_vm0, %v2096_v61 }
 0x5de   :  { %v1724_v0 = vpop.f32.mrf.mxu1 }
 0x5df   :  { %v683_v1 = vadd.f32 %v1724_v0, %v1596_v63 }
 0x5e0   :  { %v677_v2 = vpop.f32.mrf.mxu1 }
 0x5e1   :  { %v678_v3 = vadd.f32 %v1596_v63, %v677_v2  ;;  %783 = vrot.lane.b32.xlu1 %v683_v1, %s1962_s17  ;;  %v1619_v2 = vld [vmem:[%s2188_s6 + $0x2] ss:$0 sm:$0xff]  ;;  %s1632_s6 = sld [smem:[#allocation2 + $0x2]] }
 0x5e3   :  { %781 = vrot.lane.b32.xlu0 %v678_v3, %s1962_s17  ;;  %1734 = vmatprep.mubr.msk.f32.mxu1 %vm125_vm0, %v678_v3 }
 0x5e5   :  { %698 = vrot.lane.b32.xlu1 %v678_v3, %s1961_s16 }
 0x5e9   :  { %700 = vrot.lane.b32.xlu1 %v683_v1, %s1961_s16 }
 0x653   :  { %v784_v4 = vpop.permute.xlu1 %783 }
 0x654   :  { %1730 = vmatprep.subr.msk.mxu1 %vm125_vm0, %v784_v4 }
 0x655   :  { %1731 = vmatpush3.xpose.msk.msra.mxu1 %vm125_vm0, %v784_v4  ;;  %v782_v5 = vpop.permute.xlu0 %781 }
 0x656   :  { %1732 = vmatprep.subr.msk.mxu1 %vm125_vm0, %v782_v5 }
 0x657   :  { %v699_v6 = vpop.permute.xlu1 %698 }
 0x658   :  { %1727 = vmatprep.mubr.msk.f32.mxu0 %vm221_vm1, %v699_v6 }
 0x659   :  { %1733 = vmatpush3.xpose.msk.msra.mxu1 %vm125_vm0, %v782_v5 }
 0x65a   :  { %1749 = vmatprep.subr.mxu1 %v1078_v42 }
 0x65b   :  { %v701_v7 = vpop.permute.xlu1 %700 }
 0x65c   :  { %1728 = vmatmul.mubr.msk.f32.vlgmr.msra.gmra.mxu0 %vm221_vm1, %v701_v7  ;;  %1735 = vmatmul.mubr.msk.f32.vlgmr.msra.gmra.mxu1 %vm125_vm0, %v683_v1 }
 0x65d   :  { %1750 = vmatpush3.msra.mxu1 %v1078_v42 }
 0x65e   :  { %1751 = vmatprep.subr.mxu1 %v1077_v43 }
 0x65f   :  { %1752 = vmatpush3.msra.mxu1 %v1077_v43 }
 0x71c   :  { %v1729_v9 = vpop.f32.mrf.mxu0  ;;  %v1736_v10 = vpop.f32.mrf.mxu1 }
 0x71d   :  { %v778_v11 = vadd.f32 %v1729_v9, %v1600_v8  ;;  %v869_v12 = vmul.f32 0.25, %v1736_v10 }
 0x71e   :  { %v772_v13 = vpop.f32.mrf.mxu0  ;;  %v859_v14 = vpop.f32.mrf.mxu1 }
 0x71f   :  { %v773_v15 = vadd.f32 %v1600_v8, %v772_v13  ;;  %v868_v16 = vmul.f32 0.25, %v859_v14  ;;  %1737 = vmatprep.subr.mxu0 %v778_v11  ;;  %v871_v17 = vadd.f32 %v869_v12, %v2073_v20 }
 0x720   :  { %1738 = vmatpush3.msra.mxu0 %v778_v11 }
 0x721   :  { %1739 = vmatprep.subr.mxu0 %v773_v15  ;;  %v875_v18 = vsel %vm125_vm0, %v871_v17, -inf  ;;  %v870_v19 = vadd.f32 %v868_v16, %v2075_v23 }
 0x722   :  { %1740 = vmatpush3.msra.mxu0 %v773_v15  ;;  %876 = vmax.xlane.f32.xlu1 %v875_v18 }
 0x723   :  { %v872_v21 = vsel %vm125_vm0, %v870_v19, -inf  ;;  %1744 = vmatprep.subr.mxu0 %v976_v33 }
 0x724   :  { %873 = vmax.xlane.f32.xlu0 %v872_v21 }
 0x7ab   :  { %v877_v22 = vpop.xlane.xlu1 %876 }
 0x7ac   :  { %v879_v24 = vsub.f32 %v871_v17, %v877_v22 }
 0x7ad   :  { %v874_v25 = vpop.xlane.xlu0 %873 }
 0x7ae   :  { %v878_v26 = vsub.f32 %v870_v19, %v874_v25  ;;  %v882_v27 = vmul.f32 1.442695, %v879_v24  ;;  %v1458_v25 = vld [vmem:[#allocation12 + $0x10] sm:$0xff] }
 0x7b0   :  { %v880_v28 = vmul.f32 1.442695, %v878_v26 }
 0x7b2   :  { %1799 = vpow2.f32 %v880_v28 }
 0x7b3   :  { %1801 = vpow2.f32 %v882_v27 }
 0x7bf   :  { %v1800_v29 = vpop.eup %1799 }
 0x7c0   :  { %v884_v30 = vsel %vm125_vm0, %v1800_v29, 0.0  ;;  %v1802_v31 = vpop.eup %1801 }
 0x7c1   :  { %885 = vadd.xlane.f32.xlu0 %v884_v30  ;;  %v887_v32 = vsel %vm125_vm0, %v1802_v31, 0.0 }
 0x7c5   :  { %888 = vadd.xlane.f32.xlu0 %v887_v32 }
 0x84a   :  { %v886_v34 = vpop.xlane.xlu0 %885 }
 0x84b   :  { %1803 = vrcp.f32 %v886_v34  ;;  %v1629_v34 = vld [vmem:[%s2190_s8 + $0x2] ss:$0 sm:$0xff]  ;;  %s1923_s8 = scalar_lea.vmem %s1566_s12, 256 }
 0x84c   :  { %p1924_p11 = scmp.ne.s32.totalorder %s1566_s12, %s1923_s8  ;;  %p1929_p13 = scmp.lt.s32.totalorder %s1923_s8, %s1923_s8 }
 0x84e   :  { %v889_v35 = vpop.xlane.xlu0 %888  ;;  %p1930_p0 = por %p1929_p13, %p1928_p12 }
 0x84f   :  { %1805 = vrcp.f32 %v889_v35 }
 0x850   :  { %p1931_p1 = pnand %p1930_p0, %p1924_p11 }
 0x858   :  { %v1804_v36 = vpop.eup %1803 }
 0x859   :  { %v892_v37 = vmul.f32 %v1804_v36, %v1800_v29 }
 0x85b   :  { %1741 = vmatprep.mubr.msk.f32.mxu0 %vm125_vm0, %v892_v37  ;;  %v1553_v37 = vstv %s1632_s6 }
 0x85c   :  { %v1806_v38 = vpop.eup %1805 }
 0x85d   :  { %v893_v39 = vmul.f32 %v1806_v38, %v1802_v31 }
 0x85f   :  { %1742 = vmatmul.mubr.msk.f32.vlgmr.msra.gmra.mxu0 %vm125_vm0, %v893_v39 }
 0x860   :  { %1745 = vmatpush3.msra.mxu0 %v976_v33 }
 0x861   :  { %1756 = vmatprep.subr.mxu0 %v1169_v56 }
 0x91f   :  { %v1743_v40 = vpop.f32.mrf.mxu0 }
 0x921   :  { %v966_v41 = vpop.f32.mrf.mxu0 }
 0x922   :  { %1746 = vmatprep.mubr.msk.f32.mxu0 %vm221_vm1, %v966_v41 }
 0x923   :  { %1747 = vmatmul.mubr.msk.f32.vlgmr.msra.gmra.mxu0 %vm221_vm1, %v1743_v40 }
 0x924   :  { %1757 = vmatpush3.msra.mxu0 %v1169_v56 }
 0x9e3   :  { %v1748_v45 = vpop.f32.mrf.mxu0 }
 0x9e4   :  { %v1063_v46 = vadd.f32 %v1748_v45, %v1610_v44 }
 0x9e5   :  { %v1057_v47 = vpop.f32.mrf.mxu0 }
 0x9e6   :  { %v1067_v48 = vadd.f32 %v1063_v46, %v2096_v61  ;;  %v1058_v50 = vadd.f32 %v1610_v44, %v1057_v47 }
 0x9e8   :  { %v1066_v51 = vadd.f32 %v1058_v50, %v2092_v60  ;;  %v1073_v52 = vmul.f32 %v1071_v49, %v1067_v48  ;;  %vm1070_vm4 = vcmp.gt.f32.partialorder %v1067_v48, 0.0 }
 0x9ea   :  { %v1072_v53 = vmul.f32 %v1071_v49, %v1066_v51  ;;  %vm1069_vm5 = vcmp.gt.f32.partialorder %v1066_v51, 0.0  ;;  %v2137_v55 = vsel %vm1070_vm4, %v1067_v48, %v1073_v52 }
 0x9ec   :  { %v2133_v54 = vsel %vm1069_vm5, %v1066_v51, %v1072_v53 }
 0x9ed   :  { %1753 = vmatprep.mubr.msk.f32.mxu1 %vm125_vm0, %v2133_v54 }
 0x9ee   :  { %1754 = vmatmul.mubr.msk.f32.vlgmr.msra.gmra.mxu1 %vm125_vm0, %v2137_v55 }
 0xaae   :  { %v1755_v58 = vpop.f32.mrf.mxu1 }
 0xaaf   :  { %v1165_v59 = vadd.f32 %v1755_v58, %v1615_v57 }
 0xab0   :  { %v1159_v60 = vpop.f32.mrf.mxu1 }
 0xab1   :  { %v1160_v61 = vadd.f32 %v1615_v57, %v1159_v60  ;;  %1265 = vrot.lane.b32.xlu1 %v1165_v59, %s1962_s17 }
 0xab3   :  { %1263 = vrot.lane.b32.xlu0 %v1160_v61, %s1962_s17  ;;  %1765 = vmatprep.mubr.msk.f32.mxu1 %vm125_vm0, %v1160_v61 }
 0xab5   :  { %1180 = vrot.lane.b32.xlu1 %v1160_v61, %s1961_s16 }
 0xab9   :  { %1182 = vrot.lane.b32.xlu1 %v1165_v59, %s1961_s16 }
 0xb23   :  { %v1266_v62 = vpop.permute.xlu1 %1265 }
 0xb24   :  { %1761 = vmatprep.subr.msk.mxu1 %vm125_vm0, %v1266_v62 }
 0xb25   :  { %1762 = vmatpush3.xpose.msk.msra.mxu1 %vm125_vm0, %v1266_v62  ;;  %v1264_v63 = vpop.permute.xlu0 %1263 }
 0xb26   :  { %1763 = vmatprep.subr.msk.mxu1 %vm125_vm0, %v1264_v63 }
 0xb27   :  { %v1181_v0 = vpop.permute.xlu1 %1180 }
 0xb28   :  { %1758 = vmatprep.mubr.msk.f32.mxu0 %vm221_vm1, %v1181_v0 }
 0xb29   :  { %1764 = vmatpush3.xpose.msk.msra.mxu1 %vm125_vm0, %v1264_v63 }
 0xb2b   :  { %v1183_v1 = vpop.permute.xlu1 %1182 }
 0xb2c   :  { %1759 = vmatmul.mubr.msk.f32.vlgmr.msra.gmra.mxu0 %vm221_vm1, %v1183_v1  ;;  %1766 = vmatmul.mubr.msk.f32.vlgmr.msra.gmra.mxu1 %vm125_vm0, %v1165_v59 }
 0xbec   :  { %v1760_v3 = vpop.f32.mrf.mxu0  ;;  %v1767_v4 = vpop.f32.mrf.mxu1 }
 0xbed   :  { %v1260_v5 = vadd.f32 %v1760_v3, %v1619_v2  ;;  %v1351_v6 = vmul.f32 0.25, %v1767_v4 }
 0xbee   :  { %v1254_v7 = vpop.f32.mrf.mxu0  ;;  %v1341_v8 = vpop.f32.mrf.mxu1 }
 0xbef   :  { %v1255_v9 = vadd.f32 %v1619_v2, %v1254_v7  ;;  %v1350_v10 = vmul.f32 0.25, %v1341_v8  ;;  %1768 = vmatprep.subr.mxu0 %v1260_v5  ;;  %v1353_v11 = vadd.f32 %v1351_v6, %v2073_v20 }
 0xbf0   :  { %1769 = vmatpush3.msra.mxu0 %v1260_v5 }
 0xbf1   :  { %v1352_v12 = vadd.f32 %v1350_v10, %v2075_v23  ;;  %1770 = vmatprep.subr.mxu0 %v1255_v9  ;;  %v1357_v13 = vsel %vm125_vm0, %v1353_v11, -inf }
 0xbf2   :  { %1771 = vmatpush3.msra.mxu0 %v1255_v9  ;;  %1358 = vmax.xlane.f32.xlu1 %v1357_v13 }
 0xbf3   :  { %v1354_v14 = vsel %vm125_vm0, %v1352_v12, -inf  ;;  %1775 = vmatprep.subr.mxu0 %v1458_v25 }
 0xbf4   :  { %1355 = vmax.xlane.f32.xlu0 %v1354_v14 }
 0xc7b   :  { %v1359_v15 = vpop.xlane.xlu1 %1358 }
 0xc7c   :  { %v1361_v16 = vsub.f32 %v1353_v11, %v1359_v15 }
 0xc7d   :  { %v1356_v17 = vpop.xlane.xlu0 %1355 }
 0xc7e   :  { %v1360_v18 = vsub.f32 %v1352_v12, %v1356_v17  ;;  %v1364_v19 = vmul.f32 1.442695, %v1361_v16 }
 0xc80   :  { %v1362_v21 = vmul.f32 1.442695, %v1360_v18 }
 0xc82   :  { %1807 = vpow2.f32 %v1362_v21 }
 0xc83   :  { %1809 = vpow2.f32 %v1364_v19 }
 0xc8f   :  { %v1808_v20 = vpop.eup %1807 }
 0xc90   :  { %v1366_v22 = vsel %vm125_vm0, %v1808_v20, 0.0  ;;  %v1810_v23 = vpop.eup %1809 }
 0xc91   :  { %1367 = vadd.xlane.f32.xlu0 %v1366_v22  ;;  %v1369_v24 = vsel %vm125_vm0, %v1810_v23, 0.0 }
 0xc95   :  { %1370 = vadd.xlane.f32.xlu0 %v1369_v24 }
 0xd1a   :  { %v1368_v26 = vpop.xlane.xlu0 %1367 }
 0xd1b   :  { %1811 = vrcp.f32 %v1368_v26 }
 0xd1e   :  { %v1371_v27 = vpop.xlane.xlu0 %1370 }
 0xd1f   :  { %1813 = vrcp.f32 %v1371_v27 }
 0xd28   :  { %v1812_v28 = vpop.eup %1811 }
 0xd29   :  { %v1374_v29 = vmul.f32 %v1812_v28, %v1808_v20 }
 0xd2b   :  { %1772 = vmatprep.mubr.msk.f32.mxu0 %vm125_vm0, %v1374_v29 }
 0xd2c   :  { %v1814_v30 = vpop.eup %1813 }
 0xd2d   :  { %v1375_v31 = vmul.f32 %v1814_v30, %v1810_v23 }
 0xd2f   :  { %1773 = vmatmul.mubr.msk.f32.vlgmr.msra.gmra.mxu0 %vm125_vm0, %v1375_v31 }
 0xd30   :  { %1776 = vmatpush3.msra.mxu0 %v1458_v25 }
 0xdef   :  { %v1774_v32 = vpop.f32.mrf.mxu0 }
 0xdf1   :  { %v1448_v33 = vpop.f32.mrf.mxu0 }
 0xdf2   :  { %1777 = vmatprep.mubr.msk.f32.mxu0 %vm221_vm1, %v1448_v33 }
 0xdf3   :  { %1778 = vmatmul.mubr.msk.f32.vlgmr.msra.gmra.mxu0 %vm221_vm1, %v1774_v32 }
 0xeb3   :  { %v1779_v35 = vpop.f32.mrf.mxu0 }
 0xeb4   :  { %v1545_v36 = vadd.f32 %v1779_v35, %v1629_v34 }
 0xeb5   :  { %v1539_v38 = vpop.f32.mrf.mxu0 }
 0xeb6   :  { %v1549_v39 = vadd.f32 %v1545_v36, %v2137_v55  ;;  %v1540_v40 = vadd.f32 %v1629_v34, %v1539_v38 }
 0xeb8   :  { %v1555_v41 = vmul.f32 %v1553_v37, %v1549_v39  ;;  %v1548_v42 = vadd.f32 %v1540_v40, %v2133_v54  ;;  %vm1552_vm6 = vcmp.gt.f32.partialorder %v1549_v39, 0.0 }
 0xeba   :  { %v1554_v43 = vmul.f32 %v1553_v37, %v1548_v42  ;;  %vm1551_vm7 = vcmp.gt.f32.partialorder %v1548_v42, 0.0  ;;  %v1557_v44 = vsel %vm1552_vm6, %v1549_v39, %v1555_v41 }
 0xebb   :  { %1559 = vst.msk [vmem:[#allocation13 + $0x8] sm:$0xff] %vm125_vm0, %v1557_v44 }
 0xebc   :  { %v1556_v45 = vsel %vm1551_vm7, %v1548_v42, %v1554_v43 }
 0xebd   :  { %1558 = vst.msk [vmem:[#allocation13] sm:$0xff] %vm125_vm0, %v1556_v45 }
 0xebe   :  { %1934 = shalt.err (!%p1931_p1)
}
 0xebf   :  { %1571 = dma.vmem_to_hbm [thread:$0]  %s1566_s12, 256, %s2191_s9, [#allocation4], %s1955_s14, %s1955_s14, %s1956_s15  }
 0xec0   :  { %1951 = dma.done.wait [#allocation4], 256  }
 0xec1   :  { %1952 = vsyncadd [#allocation4], 4294967040 }
 0xec2   :  { %1575 = vsyncpa [#allocation3], 1 }
 0xec3   :  { %1576 = vsyncpa [#allocation8], 1 }
 0xec4   :  { %1577 = vsyncpa [#allocation11], 1 }
 0xec5   :  { %1578 = vsyncpa [#allocation4], 1 }
 0xec6   :  { %1579 = vsyncpa [#allocation5], 1 }

</bundles_post_ra>
